<compile_context>
chip_gen: v7x
topology: tpu7x:2x2x1
jax: 0.10.0
libtpu: 0.0.40
codegen_flags: <defaults>
</compile_context>

<pallas_src>
import functools
import math

import jax
import jax.numpy as jnp
from jax.experimental import pallas as pl
from jax.experimental.pallas import tpu as pltpu

_LANE = 128
_SUBLANE = 8
_BN_EPS = 1e-5


def _round_up(n, m):
    return ((n + m - 1) // m) * m


def _apply_activation(y, activate_fn):
    fn = activate_fn.lower()
    if fn == "relu":
        return jnp.maximum(y, 0.0)
    if fn == "leakyrelu":
        return jnp.where(y >= 0.0, y, 0.2 * y)      # nn.LeakyReLU(0.2)
    if fn == "tanh":
        return jnp.tanh(y)
    return y * jax.nn.sigmoid(y)                    # MemoryEfficientSwish


# --------------------------------------------------------------------------
# Fused kernel: the whole layer chain for one batch tile.
# refs = (x_ref, w0_ref, b0_ref, w1_ref, b1_ref, ..., o_ref)
# --------------------------------------------------------------------------
def _fused_mlp_kernel(*refs, n_layers, activate_fn, perform_at_end):
    x_ref = refs[0]
    o_ref = refs[1 + 2 * n_layers]
    h = x_ref[...]
    for li in range(n_layers):
        w = refs[1 + 2 * li][...]                   # [Kp, Np], compute dtype
        b = refs[2 + 2 * li][...]                   # [1, Np], f32 (BN already folded)
        # One MXU pass per layer, f32 accumulation.
        y = jnp.dot(h.astype(w.dtype), w, preferred_element_type=jnp.float32)
        y = y + b
        if li < n_layers - 1 or perform_at_end:
            y = _apply_activation(y, activate_fn)
        h = y                                       # stays on-chip (no HBM round-trip)
    o_ref[...] = h.astype(o_ref.dtype)


def _vmem_limit_bytes():
    # Generation-dependent scoped-VMEM budget (~96 MiB v5e/v6e, ~48 MiB v7x).
    try:
        cap = int(pltpu.get_tpu_info().vmem_capacity_bytes)
        return min(cap * 3 // 4, 100 * 1024 * 1024)
    except Exception:
        return 48 * 1024 * 1024                     # safe everywhere


def _choose_tm(batch, cap=512):
    # Batch tile: multiple of 8, <= cap.  On v7x (2 TensorCores/chip) split the
    # batch into >=2 "parallel" tiles so both cores get work; on v5e/v6e keep
    # one large tile (MXU is 256 rows tall, fewer grid steps).
    try:
        kind = jax.devices()[0].device_kind.lower()
        dual_core = ("v7" in kind) or ("tpu7" in kind)
    except Exception:
        dual_core = False
    n_tiles = max(1, -(-batch // cap))
    if dual_core and batch >= 32:
        n_tiles = max(n_tiles, 2)
    return _round_up(-(-batch // n_tiles), _SUBLANE)


def _fused_mlp_call(x, params, *, activate_fn, perform_at_end, tm,
                    single_buffer_weights):
    Bp, Kp0 = x.shape
    n = len(params)
    Np_last = params[-1]["w"].shape[1]
    grid = (Bp // tm,)

    in_specs = [pl.BlockSpec((tm, Kp0), lambda i: (i, 0))]   # batch-tiled activations
    operands = [x]
    for p in params:
        Kp, Np = p["w"].shape
        if single_buffer_weights:
            # Grid-invariant operands: single buffering halves their VMEM footprint.
            in_specs.append(pl.BlockSpec((Kp, Np), lambda i: (0, 0),
                                         pipeline_mode=pl.Buffered(1)))
            in_specs.append(pl.BlockSpec((1, Np), lambda i: (0, 0),
                                         pipeline_mode=pl.Buffered(1)))
        else:
            in_specs.append(pl.BlockSpec((Kp, Np), lambda i: (0, 0)))
            in_specs.append(pl.BlockSpec((1, Np), lambda i: (0, 0)))
        operands += [p["w"], p["b"]]

    out_spec = pl.BlockSpec((tm, Np_last), lambda i: (i, 0))  # lane-dense output

    # Scheduler hint summed over the fused chain.
    itemsize = jnp.dtype(x.dtype).itemsize
    fn = activate_fn.lower()
    flops, trans = 0, 0
    bytes_acc = Bp * Kp0 * itemsize + Bp * Np_last * itemsize
    for li, p in enumerate(params):
        Kp, Np = p["w"].shape
        flops += 2 * Bp * Kp * Np
        if (li < n - 1 or perform_at_end) and fn in ("swish", "tanh"):
            trans += Bp * Np
        bytes_acc += Kp * Np * jnp.dtype(p["w"].dtype).itemsize + Np * 4

    kernel = functools.partial(_fused_mlp_kernel, n_layers=n,
                               activate_fn=activate_fn,
                               perform_at_end=perform_at_end)

    return pl.pallas_call(
        kernel,
        out_shape=jax.ShapeDtypeStruct((Bp, Np_last), x.dtype),
        grid_spec=pl.GridSpec(grid=grid, in_specs=in_specs, out_specs=out_spec),
        compiler_params=pltpu.CompilerParams(
            dimension_semantics=("parallel",),          # megacore-shardable batch axis
            vmem_limit_bytes=_vmem_limit_bytes()),
        cost_estimate=pl.CostEstimate(flops=flops, transcendentals=trans,
                                      bytes_accessed=bytes_acc),
    )(*operands)


# --------------------------------------------------------------------------
# One-time (init) parameter preparation.
# --------------------------------------------------------------------------
def prepare_mlp_params(layers, *, compute_dtype=jnp.float32, eps=_BN_EPS):
    """layers: list of dicts with PyTorch-convention tensors:
        'w' [out,in], 'b' [out], optional BN 'gamma'/'beta'/'mean'/'var' [out].
    Folds eval-mode BatchNorm into W/b (in f32, before the dtype cast),
    transposes to [K, N], zero-pads K (first layer) and N to multiples of 128,
    then casts to compute_dtype.  Per-call forward does no weight work."""
    prepared = []
    prev_np = None
    for lyr in layers:
        w = jnp.asarray(lyr["w"], jnp.float32)          # [N, K] (PyTorch Linear)
        b = jnp.asarray(lyr["b"], jnp.float32)          # [N]
        N, K = w.shape
        Np = _round_up(N, _LANE)
        Kp = prev_np if prev_np is not None else _round_up(K, _LANE)

        if "gamma" in lyr:                              # fold eval-mode BatchNorm1d
            gamma = jnp.asarray(lyr["gamma"], jnp.float32)
            beta = jnp.asarray(lyr["beta"], jnp.float32)
            mean = jnp.asarray(lyr["mean"], jnp.float32)
            var = jnp.asarray(lyr["var"], jnp.float32)
            scale = gamma / jnp.sqrt(var + eps)
            w = w * scale[:, None]                      # W' = diag(scale) @ W
            b = b * scale + (beta - mean * scale)       # b' = b*scale + shift

        wt = jnp.pad(w.T, ((0, Kp - K), (0, Np - N)))   # [Kp, Np], zero padding
        bp = jnp.pad(b, (0, Np - N)).reshape(1, Np)     # f32 bias (BN folded in)

        prepared.append(dict(w=wt.astype(compute_dtype), b=bp, out_dim=N))
        prev_np = Np
    return prepared


def mlp_forward(x, params, *, activate_fn="swish", perform_at_end=True,
                compute_dtype=None, tm_cap=512):
    """Eval-mode MLP forward (dropout = identity, use_residual = False)."""
    if compute_dtype is not None:
        x = x.astype(compute_dtype)
    B, Din = x.shape
    Kp0 = params[0]["w"].shape[0]
    if Din != Kp0:                                      # lane-align contraction axis
        x = jnp.pad(x, ((0, 0), (0, Kp0 - Din)))
    tm = _choose_tm(B, tm_cap)
    Bp = _round_up(B, tm)
    if Bp != B:
        x = jnp.pad(x, ((0, Bp - B), (0, 0)))

    try:
        out = _fused_mlp_call(x, params, activate_fn=activate_fn,
                              perform_at_end=perform_at_end, tm=tm,
                              single_buffer_weights=True)
        out = jax.block_until_ready(out)
    except Exception:
        # Fallback for jax builds that reject pipeline_mode=pl.Buffered(1).
        out = _fused_mlp_call(x, params, activate_fn=activate_fn,
                              perform_at_end=perform_at_end, tm=tm,
                              single_buffer_weights=False)
    return out[:B, :params[-1]["out_dim"]]              # drop batch/lane padding


# --------------------------------------------------------------------------
# Pure-JAX reference mirroring the PyTorch module in eval mode.
# --------------------------------------------------------------------------
def _ref_mlp(x, layers, *, activate_fn="swish", perform_at_end=True, eps=_BN_EPS):
    n = len(layers)
    for i, lyr in enumerate(layers):
        y = jnp.dot(x, jnp.asarray(lyr["w"]).T,
                    precision=jax.lax.Precision.HIGHEST) + jnp.asarray(lyr["b"])
        if (i < n - 1) or perform_at_end:
            if "gamma" in lyr:
                y = (y - lyr["mean"]) / jnp.sqrt(lyr["var"] + eps) * lyr["gamma"] + lyr["beta"]
            y = _apply_activation(y, activate_fn)
        x = y
    return x


if __name__ == "__main__":
    key = jax.random.PRNGKey(0)

    def make_layers(key, dims, with_bn_last=True):
        layers = []
        n = len(dims) - 1
        for li in range(n):
            k_in, k_out = dims[li], dims[li + 1]
            key, kw, kb, kg, kbt, km, kv = jax.random.split(key, 7)
            bound = 1.0 / math.sqrt(k_in)               # nn.Linear init range
            lyr = dict(
                w=jax.random.uniform(kw, (k_out, k_in), jnp.float32, -bound, bound),
                b=jax.random.uniform(kb, (k_out,), jnp.float32, -bound, bound),
            )
            if li < n - 1 or with_bn_last:              # module: BN on last iff perform_at_end
                lyr.update(
                    gamma=jax.random.uniform(kg, (k_out,), jnp.float32, 0.5, 1.5),
                    beta=jax.random.normal(kbt, (k_out,), jnp.float32) * 0.1,
                    mean=jax.random.normal(km, (k_out,), jnp.float32) * 0.1,
                    var=jax.random.uniform(kv, (k_out,), jnp.float32, 0.5, 1.5),
                )
            layers.append(lyr)
        return key, layers

    # ---- config 1: module defaults (swish, batchnorm=True, perform_at_end=True)
    B, input_dim, hidden_dim, output_dim = 64, 256, [128], 64
    key, layers = make_layers(key, [input_dim] + hidden_dim + [output_dim])
    key, kx = jax.random.split(key)
    x = jax.random.normal(kx, (B, input_dim), jnp.float32)
    ref = _ref_mlp(x, layers, activate_fn="swish", perform_at_end=True)

    # f32 path (tight check).
    params_f32 = prepare_mlp_params(layers, compute_dtype=jnp.float32)
    out = mlp_forward(x, params_f32, activate_fn="swish", perform_at_end=True)
    out = jax.block_until_ready(out)
    assert out.shape == (B, output_dim)
    assert jnp.allclose(out, ref, atol=1e-3, rtol=1e-3), \
        float(jnp.max(jnp.abs(out - ref)))

    # bf16 weights/activations (MXU-native on v5e/v6e/v7x), f32 accumulate — loose check.
    params_bf16 = prepare_mlp_params(layers, compute_dtype=jnp.bfloat16)
    out_bf16 = mlp_forward(x, params_bf16, activate_fn="swish",
                           perform_at_end=True, compute_dtype=jnp.bfloat16)
    out_bf16 = jax.block_until_ready(out_bf16)
    assert jnp.allclose(out_bf16.astype(jnp.float32), ref, atol=0.1, rtol=0.1)

    # ---- config 2: leakyrelu, perform_at_end=False (plain linear on last layer),
    #      ragged batch / feature dims to exercise the padding paths.
    B2, in2, hid2, out2 = 37, 200, [96], 48
    key, layers2 = make_layers(key, [in2] + hid2 + [out2], with_bn_last=False)
    key, kx2 = jax.random.split(key)
    x2 = jax.random.normal(kx2, (B2, in2), jnp.float32)
    ref2 = _ref_mlp(x2, layers2, activate_fn="leakyrelu", perform_at_end=False)
    params2 = prepare_mlp_params(layers2)
    o2 = mlp_forward(x2, params2, activate_fn="leakyrelu", perform_at_end=False)
    o2 = jax.block_until_ready(o2)
    assert o2.shape == (B2, out2)
    assert jnp.allclose(o2, ref2, atol=1e-3, rtol=1e-3), \
        float(jnp.max(jnp.abs(o2 - ref2)))

    print("KERNEL_OK")
</pallas_src>

<mosaic_0001>
module attributes {stable_mosaic.version = 11 : i64} {
  func.func @_fused_mlp_kernel(%arg0: i32, %arg1: memref<64x256xf32, #tpu.memory_space<vmem>>, %arg2: memref<256x128xf32, #tpu.memory_space<vmem>>, %arg3: memref<1x128xf32, #tpu.memory_space<vmem>>, %arg4: memref<128x128xf32, #tpu.memory_space<vmem>>, %arg5: memref<1x128xf32, #tpu.memory_space<vmem>>, %arg6: memref<64x128xf32, #tpu.memory_space<vmem>>) attributes {dimension_semantics = [#tpu.dimension_semantics<parallel>], iteration_bounds = array<i64: 1>, scalar_prefetch = 0 : i64, scratch_operands = 0 : i64, tpu.core_type = #tpu.core_type<tc>, window_params = [{transform_indices = @transform_0, window_bounds = array<i64: 64, 256>}, {pipeline_mode = #tpu.pipeline_mode<synchronous>, transform_indices = @transform_1, window_bounds = array<i64: 256, 128>}, {pipeline_mode = #tpu.pipeline_mode<synchronous>, transform_indices = @transform_2, window_bounds = array<i64: 1, 128>}, {pipeline_mode = #tpu.pipeline_mode<synchronous>, transform_indices = @transform_3, window_bounds = array<i64: 128, 128>}, {pipeline_mode = #tpu.pipeline_mode<synchronous>, transform_indices = @transform_4, window_bounds = array<i64: 1, 128>}, {transform_indices = @transform_5, window_bounds = array<i64: 64, 128>}]} {
    %c0 = arith.constant 0 : index
    %c0_0 = arith.constant 0 : index
    %0 = vector.load %arg1[%c0, %c0_0] : memref<64x256xf32, #tpu.memory_space<vmem>>, vector<64x256xf32>
    %c0_1 = arith.constant 0 : index
    %c0_2 = arith.constant 0 : index
    %1 = vector.load %arg2[%c0_1, %c0_2] : memref<256x128xf32, #tpu.memory_space<vmem>>, vector<256x128xf32>
    %c0_3 = arith.constant 0 : index
    %c0_4 = arith.constant 0 : index
    %2 = vector.load %arg3[%c0_3, %c0_4] : memref<1x128xf32, #tpu.memory_space<vmem>>, vector<1x128xf32>
    %cst = arith.constant dense<0.000000e+00> : vector<64x128xf32>
    %3 = tpu.matmul %0, %1, %cst {dimension_numbers = #tpu.dot_dimension_numbers<[1], [0], [0], [1], [0, 0, 1, 1], [], []>} : vector<64x256xf32>, vector<256x128xf32>, vector<64x128xf32> -> vector<64x128xf32>
    %4 = vector.broadcast %2 : vector<1x128xf32> to vector<64x128xf32>
    %5 = arith.addf %3, %4 : vector<64x128xf32>
    %6 = arith.negf %5 : vector<64x128xf32>
    %7 = math.exp %6 : vector<64x128xf32>
    %cst_5 = arith.constant 1.000000e+00 : f32
    %8 = vector.broadcast %cst_5 : f32 to vector<64x128xf32>
    %9 = arith.addf %8, %7 : vector<64x128xf32>
    %10 = arith.divf %8, %9 : vector<64x128xf32>
    %11 = arith.mulf %5, %10 : vector<64x128xf32>
    %c0_6 = arith.constant 0 : index
    %c0_7 = arith.constant 0 : index
    %12 = vector.load %arg4[%c0_6, %c0_7] : memref<128x128xf32, #tpu.memory_space<vmem>>, vector<128x128xf32>
    %c0_8 = arith.constant 0 : index
    %c0_9 = arith.constant 0 : index
    %13 = vector.load %arg5[%c0_8, %c0_9] : memref<1x128xf32, #tpu.memory_space<vmem>>, vector<1x128xf32>
    %cst_10 = arith.constant dense<0.000000e+00> : vector<64x128xf32>
    %14 = tpu.matmul %11, %12, %cst_10 {dimension_numbers = #tpu.dot_dimension_numbers<[1], [0], [0], [1], [0, 0, 1, 1], [], []>} : vector<64x128xf32>, vector<128x128xf32>, vector<64x128xf32> -> vector<64x128xf32>
    %15 = vector.broadcast %13 : vector<1x128xf32> to vector<64x128xf32>
    %16 = arith.addf %14, %15 : vector<64x128xf32>
    %17 = arith.negf %16 : vector<64x128xf32>
    %18 = math.exp %17 : vector<64x128xf32>
    %cst_11 = arith.constant 1.000000e+00 : f32
    %19 = vector.broadcast %cst_11 : f32 to vector<64x128xf32>
    %20 = arith.addf %19, %18 : vector<64x128xf32>
    %21 = arith.divf %19, %20 : vector<64x128xf32>
    %22 = arith.mulf %16, %21 : vector<64x128xf32>
    %c0_12 = arith.constant 0 : index
    %c0_13 = arith.constant 0 : index
    %23 = vector.load %arg6[%c0_12, %c0_13] : memref<64x128xf32, #tpu.memory_space<vmem>>, vector<64x128xf32>
    tpu.vector_store %arg6[%c0_12, %c0_13], %22 {strides = array<i32>} : memref<64x128xf32, #tpu.memory_space<vmem>>, vector<64x128xf32>,
    return
  }
  func.func @transform_0(%arg0: i32) -> (i32, i32) {
    %c0_i32 = arith.constant 0 : i32
    %c0_i32_0 = arith.constant 0 : i32
    return %arg0, %c0_i32 : i32, i32
  }
  func.func @transform_1(%arg0: i32) -> (i32, i32) {
    %c0_i32 = arith.constant 0 : i32
    %c0_i32_0 = arith.constant 0 : i32
    %c0_i32_1 = arith.constant 0 : i32
    return %c0_i32, %c0_i32_0 : i32, i32
  }
  func.func @transform_2(%arg0: i32) -> (i32, i32) {
    %c0_i32 = arith.constant 0 : i32
    %c0_i32_0 = arith.constant 0 : i32
    %c0_i32_1 = arith.constant 0 : i32
    return %c0_i32, %c0_i32_0 : i32, i32
  }
  func.func @transform_3(%arg0: i32) -> (i32, i32) {
    %c0_i32 = arith.constant 0 : i32
    %c0_i32_0 = arith.constant 0 : i32
    %c0_i32_1 = arith.constant 0 : i32
    return %c0_i32, %c0_i32_0 : i32, i32
  }
  func.func @transform_4(%arg0: i32) -> (i32, i32) {
    %c0_i32 = arith.constant 0 : i32
    %c0_i32_0 = arith.constant 0 : i32
    %c0_i32_1 = arith.constant 0 : i32
    return %c0_i32, %c0_i32_0 : i32, i32
  }
  func.func @transform_5(%arg0: i32) -> (i32, i32) {
    %c0_i32 = arith.constant 0 : i32
    %c0_i32_0 = arith.constant 0 : i32
    return %arg0, %c0_i32 : i32, i32
  }
}

module attributes {stable_mosaic.version = 11 : i64} {
  func.func @_fused_mlp_kernel(%arg0: i32, %arg1: memref<64x256xf32, #tpu.memory_space<vmem>>, %arg2: memref<256x128xf32, #tpu.memory_space<vmem>>, %arg3: memref<1x128xf32, #tpu.memory_space<vmem>>, %arg4: memref<128x128xf32, #tpu.memory_space<vmem>>, %arg5: memref<1x128xf32, #tpu.memory_space<vmem>>, %arg6: memref<64x128xf32, #tpu.memory_space<vmem>>) attributes {dimension_semantics = [#tpu.dimension_semantics<parallel>], iteration_bounds = array<i64: 1>, scalar_prefetch = 0 : i64, scratch_operands = 0 : i64, tpu.core_type = #tpu.core_type<tc>, window_params = [{transform_indices = @transform_0, window_bounds = array<i64: 64, 256>}, {pipeline_mode = #tpu.pipeline_mode<synchronous>, transform_indices = @transform_1, window_bounds = array<i64: 256, 128>}, {pipeline_mode = #tpu.pipeline_mode<synchronous>, transform_indices = @transform_2, window_bounds = array<i64: 1, 128>}, {pipeline_mode = #tpu.pipeline_mode<synchronous>, transform_indices = @transform_3, window_bounds = array<i64: 128, 128>}, {pipeline_mode = #tpu.pipeline_mode<synchronous>, transform_indices = @transform_4, window_bounds = array<i64: 1, 128>}, {transform_indices = @transform_5, window_bounds = array<i64: 64, 128>}]} {
    %c0 = arith.constant 0 : index
    %c0_0 = arith.constant 0 : index
    %0 = vector.load %arg1[%c0, %c0_0] : memref<64x256xf32, #tpu.memory_space<vmem>>, vector<64x256xf32>
    %c0_1 = arith.constant 0 : index
    %c0_2 = arith.constant 0 : index
    %1 = vector.load %arg2[%c0_1, %c0_2] : memref<256x128xf32, #tpu.memory_space<vmem>>, vector<256x128xf32>
    %c0_3 = arith.constant 0 : index
    %c0_4 = arith.constant 0 : index
    %2 = vector.load %arg3[%c0_3, %c0_4] : memref<1x128xf32, #tpu.memory_space<vmem>>, vector<1x128xf32>
    %cst = arith.constant dense<0.000000e+00> : vector<64x128xf32>
    %3 = tpu.matmul %0, %1, %cst {dimension_numbers = #tpu.dot_dimension_numbers<[1], [0], [0], [1], [0, 0, 1, 1], [], []>} : vector<64x256xf32>, vector<256x128xf32>, vector<64x128xf32> -> vector<64x128xf32>
    %4 = vector.broadcast %2 : vector<1x128xf32> to vector<64x128xf32>
    %5 = arith.addf %3, %4 : vector<64x128xf32>
    %6 = arith.negf %5 : vector<64x128xf32>
    %7 = math.exp %6 : vector<64x128xf32>
    %cst_5 = arith.constant 1.000000e+00 : f32
    %8 = vector.broadcast %cst_5 : f32 to vector<64x128xf32>
    %9 = arith.addf %8, %7 : vector<64x128xf32>
    %10 = arith.divf %8, %9 : vector<64x128xf32>
    %11 = arith.mulf %5, %10 : vector<64x128xf32>
    %c0_6 = arith.constant 0 : index
    %c0_7 = arith.constant 0 : index
    %12 = vector.load %arg4[%c0_6, %c0_7] : memref<128x128xf32, #tpu.memory_space<vmem>>, vector<128x128xf32>
    %c0_8 = arith.constant 0 : index
    %c0_9 = arith.constant 0 : index
    %13 = vector.load %arg5[%c0_8, %c0_9] : memref<1x128xf32, #tpu.memory_space<vmem>>, vector<1x128xf32>
    %cst_10 = arith.constant dense<0.000000e+00> : vector<64x128xf32>
    %14 = tpu.matmul %11, %12, %cst_10 {dimension_numbers = #tpu.dot_dimension_numbers<[1], [0], [0], [1], [0, 0, 1, 1], [], []>} : vector<64x128xf32>, vector<128x128xf32>, vector<64x128xf32> -> vector<64x128xf32>
    %15 = vector.broadcast %13 : vector<1x128xf32> to vector<64x128xf32>
    %16 = arith.addf %14, %15 : vector<64x128xf32>
    %17 = arith.negf %16 : vector<64x128xf32>
    %18 = math.exp %17 : vector<64x128xf32>
    %cst_11 = arith.constant 1.000000e+00 : f32
    %19 = vector.broadcast %cst_11 : f32 to vector<64x128xf32>
    %20 = arith.addf %19, %18 : vector<64x128xf32>
    %21 = arith.divf %19, %20 : vector<64x128xf32>
    %22 = arith.mulf %16, %21 : vector<64x128xf32>
    %c0_12 = arith.constant 0 : index
    %c0_13 = arith.constant 0 : index
    %23 = vector.load %arg6[%c0_12, %c0_13] : memref<64x128xf32, #tpu.memory_space<vmem>>, vector<64x128xf32>
    tpu.vector_store %arg6[%c0_12, %c0_13], %22 {strides = array<i32>} : memref<64x128xf32, #tpu.memory_space<vmem>>, vector<64x128xf32>,
    return
  }
  func.func @transform_0(%arg0: i32) -> (i32, i32) {
    %c0_i32 = arith.constant 0 : i32
    %c0_i32_0 = arith.constant 0 : i32
    return %arg0, %c0_i32 : i32, i32
  }
  func.func @transform_1(%arg0: i32) -> (i32, i32) {
    %c0_i32 = arith.constant 0 : i32
    %c0_i32_0 = arith.constant 0 : i32
    %c0_i32_1 = arith.constant 0 : i32
    return %c0_i32, %c0_i32_0 : i32, i32
  }
  func.func @transform_2(%arg0: i32) -> (i32, i32) {
    %c0_i32 = arith.constant 0 : i32
    %c0_i32_0 = arith.constant 0 : i32
    %c0_i32_1 = arith.constant 0 : i32
    return %c0_i32, %c0_i32_0 : i32, i32
  }
  func.func @transform_3(%arg0: i32) -> (i32, i32) {
    %c0_i32 = arith.constant 0 : i32
    %c0_i32_0 = arith.constant 0 : i32
    %c0_i32_1 = arith.constant 0 : i32
    return %c0_i32, %c0_i32_0 : i32, i32
  }
  func.func @transform_4(%arg0: i32) -> (i32, i32) {
    %c0_i32 = arith.constant 0 : i32
    %c0_i32_0 = arith.constant 0 : i32
    %c0_i32_1 = arith.constant 0 : i32
    return %c0_i32, %c0_i32_0 : i32, i32
  }
  func.func @transform_5(%arg0: i32) -> (i32, i32) {
    %c0_i32 = arith.constant 0 : i32
    %c0_i32_0 = arith.constant 0 : i32
    return %arg0, %c0_i32 : i32, i32
  }
}

</mosaic_0001>

<bundles_post_ra>
// kernel: tpu_custom_call.1
= control target key start
LH: loop header
LB: loop body
LE: loop exit
PB: predicated region body
PF: predicated region fallthrough
CT: control target
= control target key end

     0   :  { %10 = vsyncpa [#allocation3], 0  ;;  %s961_s0 = inlined_call_operand.hbm [shape: f32[64,256], index: 0, kind: input, shape index: {}]   ;;  %s962_s1 = inlined_call_operand.hbm [shape: f32[256,128], index: 1, kind: input, shape index: {}]   ;;  %s963_s2 = inlined_call_operand.vmem [shape: f32[1,128], index: 2, kind: input, shape index: {}]   ;;  %s964_s3 = inlined_call_operand.hbm [shape: f32[128,128], index: 3, kind: input, shape index: {}]   ;;  %s965_s4 = inlined_call_operand.vmem [shape: f32[1,128], index: 4, kind: input, shape index: {}]   ;;  %s966_s5 = inlined_call_operand.hbm [shape: f32[64,128], index: 5, kind: output, shape index: {}]  }
   0x1   :  { %11 = vsyncpa [#allocation6], 0 }
   0x2   :  { %12 = vsyncpa [#allocation4], 0  ;;  %s860_s18 = smov [#allocation5]   ;;  %s766_s22 = scalar_lea.hbm %s962_s1, 4096 }
   0x3   :  { %s30_s19 = sshll.u32 %s860_s18, 4  ;;  %p767_p0 = scmp.ne.s32.totalorder %s962_s1, %s766_s22  ;;  %s31_s19 = int_to_ptr.vmem [resolvable:$true] %s30_s19 }
   0x4   :  { %p770_p1 = scmp.lt.u32.totalorder %s766_s22, %s962_s1 }
   0x6   :  { %p772_p2 = pnand %p770_p1, %p767_p0 }
   0x8   :  { %775 = shalt.err (!%p772_p2)
}
   0x9   :  { %s776_s27 = scalar_lea.vmem %s31_s19, 4096  ;;  %p781_p4 = scmp.lt.s32.totalorder %s31_s19, %s31_s19 }
   0xa   :  { %p777_p3 = scmp.ne.s32.totalorder %s31_s19, %s776_s27  ;;  %p782_p5 = scmp.lt.s32.totalorder %s776_s27, %s776_s27 }
   0xc   :  { %p783_p6 = por %p782_p5, %p781_p4 }
   0xe   :  { %p784_p7 = pnand %p783_p6, %p777_p3 }
  0x10   :  { %787 = shalt.err (!%p784_p7)
}
  0x11   :  { %s861_s28 = smov 128   ;;  %s862_s29 = smov 8  }
  0x12   :  { %36 = dma.hbm_to_vmem [thread:$0]  %s962_s1, 4096, %s31_s19, [#allocation6], %s861_s28, %s861_s28, %s862_s29  }
  0x13   :  { %s863_s7 = smov [#allocation2]   ;;  %s788_s11 = scalar_lea.hbm %s961_s0, 2048 }
  0x14   :  { %s18_s8 = sshll.u32 %s863_s7, 4  ;;  %p789_p8 = scmp.ne.s32.totalorder %s961_s0, %s788_s11  ;;  %s19_s8 = int_to_ptr.vmem [resolvable:$true] %s18_s8 }
  0x15   :  { %p792_p9 = scmp.lt.u32.totalorder %s788_s11, %s961_s0 }
  0x17   :  { %p794_p10 = pnand %p792_p9, %p789_p8 }
  0x19   :  { %797 = shalt.err (!%p794_p10)
}
  0x1a   :  { %s798_s16 = scalar_lea.vmem %s19_s8, 2048  ;;  %p803_p12 = scmp.lt.s32.totalorder %s19_s8, %s19_s8 }
  0x1b   :  { %p799_p11 = scmp.ne.s32.totalorder %s19_s8, %s798_s16  ;;  %p804_p13 = scmp.lt.s32.totalorder %s798_s16, %s798_s16 }
  0x1d   :  { %p805_p0 = por %p804_p13, %p803_p12 }
  0x1f   :  { %p806_p1 = pnand %p805_p0, %p799_p11 }
  0x21   :  { %809 = shalt.err (!%p806_p1)
}
  0x22   :  { %s864_s1 = smov 256   ;;  %s865_s17 = smov 16  }
  0x23   :  { %24 = dma.hbm_to_vmem [thread:$0]  %s961_s0, 2048, %s19_s8, [#allocation3], %s864_s1, %s864_s1, %s865_s17  }
  0x24   :  { %s866_s20 = smov [#allocation7]   ;;  %s810_s24 = scalar_lea.hbm %s964_s3, 2048 }
  0x25   :  { %s44_s21 = sshll.u32 %s866_s20, 4  ;;  %p811_p2 = scmp.ne.s32.totalorder %s964_s3, %s810_s24  ;;  %s45_s21 = int_to_ptr.vmem [resolvable:$true] %s44_s21 }
  0x26   :  { %p814_p3 = scmp.lt.u32.totalorder %s810_s24, %s964_s3 }
  0x28   :  { %p816_p4 = pnand %p814_p3, %p811_p2 }
  0x2a   :  { %819 = shalt.err (!%p816_p4)
}
  0x2b   :  { %s820_s6 = scalar_lea.vmem %s45_s21, 2048  ;;  %p825_p6 = scmp.lt.s32.totalorder %s45_s21, %s45_s21 }
  0x2c   :  { %p821_p5 = scmp.ne.s32.totalorder %s45_s21, %s820_s6  ;;  %p826_p7 = scmp.lt.s32.totalorder %s820_s6, %s820_s6 }
  0x2e   :  { %p827_p8 = por %p826_p7, %p825_p6 }
  0x30   :  { %p828_p9 = pnand %p827_p8, %p821_p5 }
  0x32   :  { %831 = shalt.err (!%p828_p9)
}
  0x33   :  { %50 = dma.hbm_to_vmem [thread:$0]  %s964_s3, 2048, %s45_s21, [#allocation6], %s861_s28, %s861_s28, %s862_s29  }
  0x34   :  { %854 = dma.done.wait [#allocation3], 2048  }
  0x35   :  { %855 = vsyncadd [#allocation3], 4294965248 }
  0x36   :  { %856 = dma.done.wait [#allocation6], 6144  }
  0x37   :  { %857 = vsyncadd [#allocation6], 4294961152  ;;  %v94_v0 = vld [vmem:[#allocation5 + $0x80] sm:$0xff]  ;;  %v95_v1 = vld [vmem:[#allocation5 + $0x88] sm:$0xff] }
  0x38   :  { %v78_v2 = vld [vmem:[#allocation5] sm:$0xff]  ;;  %v630_v3 = vpack.c.bf16 %v95_v1, %v94_v0  ;;  %v79_v4 = vld [vmem:[#allocation5 + $0x8] sm:$0xff]  ;;  %v96_v5 = vld [vmem:[#allocation5 + $0x90] sm:$0xff] }
  0x39   :  { %v97_v6 = vld [vmem:[#allocation5 + $0x98] sm:$0xff]  ;;  %v632_v7 = vpack.c.bf16 %v79_v4, %v78_v2  ;;  %v80_v9 = vld [vmem:[#allocation5 + $0x10] sm:$0xff]  ;;  %v98_v11 = vld [vmem:[#allocation5 + $0xa0] sm:$0xff] }
  0x3a   :  { %v634_v8 = vpack.c.bf16 %v97_v6, %v96_v5  ;;  %v81_v10 = vld [vmem:[#allocation5 + $0x18] sm:$0xff]  ;;  %631 = vmatprep.subr.bf16.mxu0 %v630_v3  ;;  %v99_v12 = vld [vmem:[#allocation5 + $0xa8] sm:$0xff]  ;;  %v82_v15 = vld [vmem:[#allocation5 + $0x20] sm:$0xff] }
  0x3b   :  { %633 = vmatpush3.bf16.msra.mxu0 %v632_v7  ;;  %v636_v13 = vpack.c.bf16 %v81_v10, %v80_v9  ;;  %v638_v14 = vpack.c.bf16 %v99_v12, %v98_v11  ;;  %v83_v16 = vld [vmem:[#allocation5 + $0x28] sm:$0xff]  ;;  %v100_v17 = vld [vmem:[#allocation5 + $0xb0] sm:$0xff]  ;;  %v101_v18 = vld [vmem:[#allocation5 + $0xb8] sm:$0xff] }
  0x3c   :  { %635 = vmatprep.subr.bf16.mxu0 %v634_v8  ;;  %v640_v19 = vpack.c.bf16 %v83_v16, %v82_v15  ;;  %v642_v20 = vpack.c.bf16 %v101_v18, %v100_v17  ;;  %v84_v21 = vld [vmem:[#allocation5 + $0x30] sm:$0xff]  ;;  %v85_v22 = vld [vmem:[#allocation5 + $0x38] sm:$0xff]  ;;  %v102_v23 = vld [vmem:[#allocation5 + $0xc0] sm:$0xff] }
  0x3d   :  { %v103_v24 = vld [vmem:[#allocation5 + $0xc8] sm:$0xff]  ;;  %v644_v26 = vpack.c.bf16 %v85_v22, %v84_v21  ;;  %v86_v28 = vld [vmem:[#allocation5 + $0x40] sm:$0xff]  ;;  %v104_v30 = vld [vmem:[#allocation5 + $0xd0] sm:$0xff] }
  0x3e   :  { %v63_v25 = vld [vmem:[#allocation2 + $0x8] sm:$0xff]  ;;  %v646_v27 = vpack.c.bf16 %v103_v24, %v102_v23  ;;  %v105_v31 = vld [vmem:[#allocation5 + $0xd8] sm:$0xff]  ;;  %v88_v34 = vld [vmem:[#allocation5 + $0x50] sm:$0xff] }
  0x3f   :  { %637 = vmatpush3.bf16.msra.mxu0 %v636_v13  ;;  %181 = vmatprep.mubr.f32.mxu0 %v63_v25  ;;  %v87_v29 = vld [vmem:[#allocation5 + $0x48] sm:$0xff]  ;;  %v650_v33 = vpack.c.bf16 %v105_v31, %v104_v30  ;;  %v89_v35 = vld [vmem:[#allocation5 + $0x58] sm:$0xff]  ;;  %v106_v36 = vld [vmem:[#allocation5 + $0xe0] sm:$0xff] }
  0x40   :  { %639 = vmatprep.subr.bf16.mxu0 %v638_v14  ;;  %v648_v32 = vpack.c.bf16 %v87_v29, %v86_v28  ;;  %v107_v37 = vld [vmem:[#allocation5 + $0xe8] sm:$0xff]  ;;  %v652_v38 = vpack.c.bf16 %v89_v35, %v88_v34  ;;  %v90_v40 = vld [vmem:[#allocation5 + $0x60] sm:$0xff]  ;;  %v108_v42 = vld [vmem:[#allocation5 + $0xf0] sm:$0xff] }
  0x41   :  { %v654_v39 = vpack.c.bf16 %v107_v37, %v106_v36  ;;  %v91_v41 = vld [vmem:[#allocation5 + $0x68] sm:$0xff]  ;;  %v109_v43 = vld [vmem:[#allocation5 + $0xf8] sm:$0xff]  ;;  %v92_v46 = vld [vmem:[#allocation5 + $0x70] sm:$0xff] }
  0x42   :  { %v656_v44 = vpack.c.bf16 %v91_v41, %v90_v40  ;;  %v658_v45 = vpack.c.bf16 %v109_v43, %v108_v42  ;;  %v93_v47 = vld [vmem:[#allocation5 + $0x78] sm:$0xff]  ;;  %v62_v49 = vld [vmem:[#allocation2] sm:$0xff]  ;;  %v64_v51 = vld [vmem:[#allocation2 + $0x10] sm:$0xff] }
  0x43   :  { %641 = vmatpush3.bf16.msra.mxu0 %v640_v19  ;;  %v660_v48 = vpack.c.bf16 %v93_v47, %v92_v46  ;;  %v65_v50 = vld [vmem:[#allocation2 + $0x18] sm:$0xff]  ;;  %v67_v52 = vld [vmem:[#allocation2 + $0x28] sm:$0xff]  ;;  %v66_v53 = vld [vmem:[#allocation2 + $0x20] sm:$0xff] }
  0x44   :  { %643 = vmatprep.subr.bf16.mxu0 %v642_v20  ;;  %v69_v54 = vld [vmem:[#allocation2 + $0x38] sm:$0xff]  ;;  %v68_v55 = vld [vmem:[#allocation2 + $0x30] sm:$0xff]  ;;  %v71_v56 = vld [vmem:[#allocation2 + $0x48] sm:$0xff] }
  0x45   :  { %v70_v57 = vld [vmem:[#allocation2 + $0x40] sm:$0xff]  ;;  %v73_v58 = vld [vmem:[#allocation2 + $0x58] sm:$0xff]  ;;  %v72_v59 = vld [vmem:[#allocation2 + $0x50] sm:$0xff] }
  0x46   :  { %v75_v60 = vld [vmem:[#allocation2 + $0x68] sm:$0xff]  ;;  %v74_v61 = vld [vmem:[#allocation2 + $0x60] sm:$0xff]  ;;  %v77_v62 = vld [vmem:[#allocation2 + $0x78] sm:$0xff] }
  0x47   :  { %645 = vmatpush3.bf16.msra.mxu0 %v644_v26  ;;  %v76_v63 = vld [vmem:[#allocation2 + $0x70] sm:$0xff]  ;;  %v278_v0 = vld [vmem:[#allocation7] sm:$0xff]  ;;  %v279_v1 = vld [vmem:[#allocation7 + $0x8] sm:$0xff] }
  0x48   :  { %647 = vmatprep.subr.bf16.mxu0 %v646_v27  ;;  %v662_v2 = vpack.c.bf16 %v279_v1, %v278_v0  ;;  %v280_v3 = vld [vmem:[#allocation7 + $0x10] sm:$0xff]  ;;  %v281_v4 = vld [vmem:[#allocation7 + $0x18] sm:$0xff]  ;;  %v282_v6 = vld [vmem:[#allocation7 + $0x20] sm:$0xff] }
  0x49   :  { %v666_v5 = vpack.c.bf16 %v281_v4, %v280_v3  ;;  %v283_v7 = vld [vmem:[#allocation7 + $0x28] sm:$0xff]  ;;  %v284_v9 = vld [vmem:[#allocation7 + $0x30] sm:$0xff]  ;;  %v285_v10 = vld [vmem:[#allocation7 + $0x38] sm:$0xff] }
  0x4a   :  { %663 = vmatprep.subr.bf16.mxu1 %v662_v2  ;;  %v670_v8 = vpack.c.bf16 %v283_v7, %v282_v6  ;;  %v674_v11 = vpack.c.bf16 %v285_v10, %v284_v9  ;;  %v286_v12 = vld [vmem:[#allocation7 + $0x40] sm:$0xff]  ;;  %v287_v13 = vld [vmem:[#allocation7 + $0x48] sm:$0xff]  ;;  %v288_v15 = vld [vmem:[#allocation7 + $0x50] sm:$0xff] }
  0x4b   :  { %649 = vmatpush3.bf16.msra.mxu0 %v648_v32  ;;  %665 = vmatpush3.bf16.msra.mxu1 %v662_v2  ;;  %v678_v14 = vpack.c.bf16 %v287_v13, %v286_v12  ;;  %v289_v16 = vld [vmem:[#allocation7 + $0x58] sm:$0xff]  ;;  %v290_v18 = vld [vmem:[#allocation7 + $0x60] sm:$0xff]  ;;  %v291_v19 = vld [vmem:[#allocation7 + $0x68] sm:$0xff] }
  0x4c   :  { %651 = vmatprep.subr.bf16.mxu0 %v650_v33  ;;  %667 = vmatprep.subr.bf16.mxu1 %v666_v5  ;;  %v682_v17 = vpack.c.bf16 %v289_v16, %v288_v15  ;;  %v686_v20 = vpack.c.bf16 %v291_v19, %v290_v18  ;;  %v292_v21 = vld [vmem:[#allocation7 + $0x70] sm:$0xff]  ;;  %v293_v22 = vld [vmem:[#allocation7 + $0x78] sm:$0xff]  ;;  %v488_v26 = vld [vmem:[%s963_s2] ss:$0 sm:$0xff] }
  0x4d   :  { %v690_v23 = vpack.c.bf16 %v293_v22, %v292_v21 }
  0x4f   :  { %653 = vmatpush3.bf16.msra.mxu0 %v652_v38  ;;  %669 = vmatpush3.bf16.msra.mxu1 %v666_v5 }
  0x50   :  { %655 = vmatprep.subr.bf16.mxu0 %v654_v39  ;;  %671 = vmatprep.subr.bf16.mxu1 %v670_v8 }
  0x53   :  { %657 = vmatpush3.bf16.msra.mxu0 %v656_v44  ;;  %673 = vmatpush3.bf16.msra.mxu1 %v670_v8 }
  0x54   :  { %659 = vmatprep.subr.bf16.mxu0 %v658_v45  ;;  %675 = vmatprep.subr.bf16.mxu1 %v674_v11 }
  0x57   :  { %661 = vmatpush3.bf16.msra.mxu0 %v660_v48  ;;  %677 = vmatpush3.bf16.msra.mxu1 %v674_v11 }
  0x58   :  { %679 = vmatprep.subr.bf16.mxu1 %v678_v14 }
  0x5a   :  { %182 = vmatmul.mubr.f32.vlgmr.msra.gmra.mrb[0].mxu0 %v62_v49 }
  0x5b   :  { %186 = vmatprep.mubr.f32.mxu0 %v65_v50  ;;  %681 = vmatpush3.bf16.msra.mxu1 %v678_v14 }
  0x5c   :  { %683 = vmatprep.subr.bf16.mxu1 %v682_v17 }
  0x5e   :  { %187 = vmatmul.mubr.f32.gmra.mrb[2].mxu0 %v64_v51 }
  0x5f   :  { %191 = vmatprep.mubr.f32.mxu0 %v67_v52  ;;  %685 = vmatpush3.bf16.msra.mxu1 %v682_v17 }
  0x60   :  { %687 = vmatprep.subr.bf16.mxu1 %v686_v20 }
  0x62   :  { %192 = vmatmul.mubr.f32.gmra.mrb[4].mxu0 %v66_v53 }
  0x63   :  { %196 = vmatprep.mubr.f32.mxu0 %v69_v54  ;;  %689 = vmatpush3.bf16.msra.mxu1 %v686_v20 }
  0x64   :  { %691 = vmatprep.subr.bf16.mxu1 %v690_v23 }
  0x66   :  { %197 = vmatmul.mubr.f32.gmra.mrb[6].mxu0 %v68_v55 }
  0x67   :  { %201 = vmatprep.mubr.f32.mxu0 %v71_v56  ;;  %693 = vmatpush3.bf16.msra.mxu1 %v690_v23 }
  0x6a   :  { %202 = vmatmul.mubr.f32.gmra.mrb[8].mxu0 %v70_v57 }
  0x6b   :  { %206 = vmatprep.mubr.f32.mxu0 %v73_v58 }
  0x6e   :  { %207 = vmatmul.mubr.f32.gmra.mrb[10].mxu0 %v72_v59 }
  0x6f   :  { %211 = vmatprep.mubr.f32.mxu0 %v75_v60 }
  0x72   :  { %212 = vmatmul.mubr.f32.gmra.mrb[12].mxu0 %v74_v61 }
  0x73   :  { %216 = vmatprep.mubr.f32.mxu0 %v77_v62 }
  0x76   :  { %217 = vmatmul.mubr.f32.gmra.mrb[14].mxu0 %v76_v63 }
 0x12d   :  { %v538_v24 = vpop.f32.mrb[0].mxu0 }
 0x12e   :  { %v539_v25 = vpop.f32.mrb[1].mxu0 }
 0x12f   :  { %v540_v27 = vadd.f32 %v539_v25, %v538_v24 }
 0x131   :  { %v541_v28 = vpop.f32.mrb[2].mxu0  ;;  %v184_v29 = vadd.f32 %v540_v27, %v488_v26 }
 0x132   :  { %v542_v30 = vpop.f32.mrb[3].mxu0 }
 0x133   :  { %v543_v31 = vadd.f32 %v542_v30, %v541_v28  ;;  %v489_v32 = vmul.f32 -1.442695, %v184_v29 }
 0x135   :  { %v189_v33 = vadd.f32 %v543_v31, %v488_v26  ;;  %v544_v34 = vpop.f32.mrb[4].mxu0  ;;  %702 = vpow2.f32 %v489_v32 }
 0x136   :  { %v545_v35 = vpop.f32.mrb[5].mxu0 }
 0x137   :  { %v490_v36 = vmul.f32 -1.442695, %v189_v33  ;;  %v546_v37 = vadd.f32 %v545_v35, %v544_v34 }
 0x139   :  { %704 = vpow2.f32 %v490_v36  ;;  %v194_v38 = vadd.f32 %v546_v37, %v488_v26  ;;  %v547_v39 = vpop.f32.mrb[6].mxu0 }
 0x13a   :  { %v548_v40 = vpop.f32.mrb[7].mxu0 }
 0x13b   :  { %v491_v41 = vmul.f32 -1.442695, %v194_v38  ;;  %v549_v42 = vadd.f32 %v548_v40, %v547_v39 }
 0x13d   :  { %706 = vpow2.f32 %v491_v41  ;;  %v199_v43 = vadd.f32 %v549_v42, %v488_v26  ;;  %v550_v44 = vpop.f32.mrb[8].mxu0 }
 0x13e   :  { %v551_v45 = vpop.f32.mrb[9].mxu0 }
 0x13f   :  { %v703_v46 = vpop.eup %702  ;;  %v492_v47 = vmul.f32 -1.442695, %v199_v43  ;;  %v552_v48 = vadd.f32 %v551_v45, %v550_v44 }
 0x140   :  { %v246_v49 = vadd.f32 1.0, %v703_v46 }
 0x141   :  { %708 = vpow2.f32 %v492_v47  ;;  %v204_v50 = vadd.f32 %v552_v48, %v488_v26  ;;  %v553_v51 = vpop.f32.mrb[10].mxu0 }
 0x142   :  { %v554_v52 = vpop.f32.mrb[11].mxu0  ;;  %710 = vrcp.f32 %v246_v49 }
 0x143   :  { %v705_v53 = vpop.eup %704  ;;  %v493_v54 = vmul.f32 -1.442695, %v204_v50  ;;  %v555_v55 = vadd.f32 %v554_v52, %v553_v51 }
 0x144   :  { %v247_v56 = vadd.f32 1.0, %v705_v53 }
 0x145   :  { %712 = vpow2.f32 %v493_v54  ;;  %v209_v57 = vadd.f32 %v555_v55, %v488_v26  ;;  %v556_v58 = vpop.f32.mrb[12].mxu0 }
 0x146   :  { %714 = vrcp.f32 %v247_v56  ;;  %v557_v59 = vpop.f32.mrb[13].mxu0 }
 0x147   :  { %v707_v60 = vpop.eup %706  ;;  %v494_v61 = vmul.f32 -1.442695, %v209_v57  ;;  %v558_v62 = vadd.f32 %v557_v59, %v556_v58 }
 0x148   :  { %v248_v63 = vadd.f32 1.0, %v707_v60 }
 0x149   :  { %716 = vpow2.f32 %v494_v61  ;;  %v214_v0 = vadd.f32 %v558_v62, %v488_v26  ;;  %v559_v1 = vpop.f32.mrb[14].mxu0 }
 0x14a   :  { %718 = vrcp.f32 %v248_v63  ;;  %v560_v2 = vpop.f32.mrb[15].mxu0 }
 0x14b   :  { %v709_v3 = vpop.eup %708  ;;  %v495_v4 = vmul.f32 -1.442695, %v214_v0  ;;  %v561_v5 = vadd.f32 %v560_v2, %v559_v1 }
 0x14c   :  { %v711_v6 = vpop.eup %710  ;;  %v249_v7 = vadd.f32 1.0, %v709_v3 }
 0x14d   :  { %720 = vpow2.f32 %v495_v4  ;;  %v219_v8 = vadd.f32 %v561_v5, %v488_v26  ;;  %v270_v9 = vmul.f32 %v711_v6, %v184_v29 }
 0x14e   :  { %722 = vrcp.f32 %v249_v7 }
 0x14f   :  { %v713_v10 = vpop.eup %712  ;;  %v496_v11 = vmul.f32 -1.442695, %v219_v8  ;;  %618 = vmatprep.mubr.f32.mxu1 %v270_v9 }
 0x150   :  { %v715_v12 = vpop.eup %714  ;;  %v250_v13 = vadd.f32 1.0, %v713_v10 }
 0x151   :  { %724 = vpow2.f32 %v496_v11  ;;  %v271_v14 = vmul.f32 %v715_v12, %v189_v33  ;;  %v497_v33 = vld [vmem:[%s965_s4] ss:$0 sm:$0xff]  ;;  %s867_s4 = smov [#allocation8]  }
 0x152   :  { %726 = vrcp.f32 %v250_v13  ;;  %s475_s10 = sshll.u32 %s867_s4, 4  ;;  %s476_s10 = int_to_ptr.vmem [resolvable:$true] %s475_s10 }
 0x153   :  { %v717_v15 = vpop.eup %716  ;;  %619 = vmatmul.mubr.f32.vlgmr.msra.gmra.mrb[0].mxu1 %v271_v14  ;;  %s832_s11 = scalar_lea.vmem %s476_s10, 1024  ;;  %p837_p11 = scmp.lt.s32.totalorder %s476_s10, %s476_s10 }
 0x154   :  { %v719_v16 = vpop.eup %718  ;;  %v251_v17 = vadd.f32 1.0, %v717_v15  ;;  %p833_p10 = scmp.ne.s32.totalorder %s476_s10, %s832_s11  ;;  %p838_p12 = scmp.lt.s32.totalorder %s832_s11, %s832_s11 }
 0x155   :  { %v272_v18 = vmul.f32 %v719_v16, %v194_v38 }
 0x156   :  { %728 = vrcp.f32 %v251_v17  ;;  %p839_p13 = por %p838_p12, %p837_p11 }
 0x157   :  { %v721_v19 = vpop.eup %720  ;;  %621 = vmatprep.mubr.f32.mxu1 %v272_v18 }
 0x158   :  { %v723_v20 = vpop.eup %722  ;;  %v252_v21 = vadd.f32 1.0, %v721_v19  ;;  %p840_p0 = pnand %p839_p13, %p833_p10 }
 0x159   :  { %v273_v22 = vmul.f32 %v723_v20, %v199_v43 }
 0x15a   :  { %730 = vrcp.f32 %v252_v21 }
 0x15b   :  { %v725_v23 = vpop.eup %724  ;;  %622 = vmatmul.mubr.f32.gmra.mrb[2].mxu1 %v273_v22 }
 0x15c   :  { %v727_v24 = vpop.eup %726  ;;  %v253_v25 = vadd.f32 1.0, %v725_v23 }
 0x15d   :  { %v274_v26 = vmul.f32 %v727_v24, %v204_v50 }
 0x15e   :  { %732 = vrcp.f32 %v253_v25 }
 0x15f   :  { %624 = vmatprep.mubr.f32.mxu1 %v274_v26 }
 0x160   :  { %v729_v27 = vpop.eup %728 }
 0x161   :  { %v275_v28 = vmul.f32 %v729_v27, %v209_v57 }
 0x163   :  { %625 = vmatmul.mubr.f32.gmra.mrb[4].mxu1 %v275_v28 }
 0x164   :  { %v731_v29 = vpop.eup %730 }
 0x165   :  { %v276_v30 = vmul.f32 %v731_v29, %v214_v0 }
 0x167   :  { %627 = vmatprep.mubr.f32.mxu1 %v276_v30 }
 0x168   :  { %v733_v31 = vpop.eup %732 }
 0x169   :  { %v277_v32 = vmul.f32 %v733_v31, %v219_v8 }
 0x16b   :  { %628 = vmatmul.mubr.f32.gmra.mrb[6].mxu1 %v277_v32 }
 0x226   :  { %v620_v34 = vpop.f32.mrb[0].mxu1 }
 0x227   :  { %v373_v35 = vadd.f32 %v620_v34, %v497_v33  ;;  %v367_v36 = vpop.f32.mrb[1].mxu1 }
 0x228   :  { %v368_v37 = vadd.f32 %v497_v33, %v367_v36 }
 0x229   :  { %v499_v38 = vmul.f32 -1.442695, %v373_v35 }
 0x22a   :  { %v498_v39 = vmul.f32 -1.442695, %v368_v37 }
 0x22b   :  { %734 = vpow2.f32 %v499_v38 }
 0x22c   :  { %736 = vpow2.f32 %v498_v39 }
 0x22e   :  { %v623_v40 = vpop.f32.mrb[2].mxu1 }
 0x22f   :  { %v383_v41 = vadd.f32 %v623_v40, %v497_v33  ;;  %v377_v42 = vpop.f32.mrb[3].mxu1 }
 0x230   :  { %v378_v43 = vadd.f32 %v497_v33, %v377_v42 }
 0x231   :  { %v501_v44 = vmul.f32 -1.442695, %v383_v41 }
 0x232   :  { %v500_v45 = vmul.f32 -1.442695, %v378_v43 }
 0x233   :  { %738 = vpow2.f32 %v501_v44 }
 0x234   :  { %740 = vpow2.f32 %v500_v45 }
 0x235   :  { %v735_v46 = vpop.eup %734 }
 0x236   :  { %v737_v47 = vpop.eup %736  ;;  %v431_v48 = vadd.f32 1.0, %v735_v46  ;;  %v626_v49 = vpop.f32.mrb[4].mxu1 }
 0x237   :  { %v430_v50 = vadd.f32 1.0, %v737_v47  ;;  %v393_v51 = vadd.f32 %v626_v49, %v497_v33  ;;  %v387_v52 = vpop.f32.mrb[5].mxu1 }
 0x238   :  { %742 = vrcp.f32 %v431_v48  ;;  %v388_v53 = vadd.f32 %v497_v33, %v387_v52 }
 0x239   :  { %744 = vrcp.f32 %v430_v50  ;;  %v503_v54 = vmul.f32 -1.442695, %v393_v51 }
 0x23a   :  { %v502_v55 = vmul.f32 -1.442695, %v388_v53 }
 0x23b   :  { %746 = vpow2.f32 %v503_v54 }
 0x23c   :  { %748 = vpow2.f32 %v502_v55 }
 0x23d   :  { %v739_v56 = vpop.eup %738 }
 0x23e   :  { %v741_v57 = vpop.eup %740  ;;  %v433_v58 = vadd.f32 1.0, %v739_v56  ;;  %v629_v59 = vpop.f32.mrb[6].mxu1 }
 0x23f   :  { %v432_v60 = vadd.f32 1.0, %v741_v57  ;;  %v403_v61 = vadd.f32 %v629_v59, %v497_v33  ;;  %v397_v62 = vpop.f32.mrb[7].mxu1 }
 0x240   :  { %750 = vrcp.f32 %v433_v58  ;;  %v398_v63 = vadd.f32 %v497_v33, %v397_v62 }
 0x241   :  { %752 = vrcp.f32 %v432_v60  ;;  %v505_v0 = vmul.f32 -1.442695, %v403_v61 }
 0x242   :  { %v743_v1 = vpop.eup %742  ;;  %v504_v2 = vmul.f32 -1.442695, %v398_v63 }
 0x243   :  { %v745_v3 = vpop.eup %744  ;;  %v455_v4 = vmul.f32 %v743_v1, %v373_v35  ;;  %754 = vpow2.f32 %v505_v0 }
 0x244   :  { %v454_v5 = vmul.f32 %v745_v3, %v368_v37  ;;  %756 = vpow2.f32 %v504_v2 }
 0x245   :  { %v747_v6 = vpop.eup %746  ;;  %463 = vst [vmem:[#allocation8 + $0x8] sm:$0xff] %v455_v4 }
 0x246   :  { %v749_v7 = vpop.eup %748  ;;  %462 = vst [vmem:[#allocation8] sm:$0xff] %v454_v5  ;;  %v435_v8 = vadd.f32 1.0, %v747_v6 }
 0x247   :  { %v434_v9 = vadd.f32 1.0, %v749_v7 }
 0x248   :  { %758 = vrcp.f32 %v435_v8 }
 0x249   :  { %760 = vrcp.f32 %v434_v9 }
 0x24a   :  { %v751_v10 = vpop.eup %750 }
 0x24b   :  { %v753_v11 = vpop.eup %752  ;;  %v457_v12 = vmul.f32 %v751_v10, %v383_v41 }
 0x24c   :  { %v456_v13 = vmul.f32 %v753_v11, %v378_v43 }
 0x24d   :  { %v755_v14 = vpop.eup %754  ;;  %465 = vst [vmem:[#allocation8 + $0x18] sm:$0xff] %v457_v12 }
 0x24e   :  { %v757_v15 = vpop.eup %756  ;;  %464 = vst [vmem:[#allocation8 + $0x10] sm:$0xff] %v456_v13  ;;  %v437_v16 = vadd.f32 1.0, %v755_v14 }
 0x24f   :  { %v436_v17 = vadd.f32 1.0, %v757_v15 }
 0x250   :  { %762 = vrcp.f32 %v437_v16 }
 0x251   :  { %764 = vrcp.f32 %v436_v17 }
 0x252   :  { %v759_v18 = vpop.eup %758 }
 0x253   :  { %v761_v19 = vpop.eup %760  ;;  %v459_v20 = vmul.f32 %v759_v18, %v393_v51 }
 0x254   :  { %v458_v21 = vmul.f32 %v761_v19, %v388_v53 }
 0x255   :  { %467 = vst [vmem:[#allocation8 + $0x28] sm:$0xff] %v459_v20 }
 0x256   :  { %466 = vst [vmem:[#allocation8 + $0x20] sm:$0xff] %v458_v21 }
 0x25a   :  { %v763_v22 = vpop.eup %762 }
 0x25b   :  { %v765_v23 = vpop.eup %764  ;;  %v461_v24 = vmul.f32 %v763_v22, %v403_v61 }
 0x25c   :  { %v460_v25 = vmul.f32 %v765_v23, %v398_v63 }
 0x25d   :  { %469 = vst [vmem:[#allocation8 + $0x38] sm:$0xff] %v461_v24 }
 0x25e   :  { %468 = vst [vmem:[#allocation8 + $0x30] sm:$0xff] %v460_v25 }
 0x25f   :  { %843 = shalt.err (!%p840_p0)
}
 0x260   :  { %s844_s14 = scalar_lea.hbm %s966_s5, 1024 }
 0x261   :  { %p845_p1 = scmp.ne.s32.totalorder %s966_s5, %s844_s14  ;;  %p848_p2 = scmp.lt.u32.totalorder %s844_s14, %s966_s5 }
 0x263   :  { %p850_p3 = pnand %p848_p2, %p845_p1 }
 0x265   :  { %853 = shalt.err (!%p850_p3)
}
 0x266   :  { %481 = dma.vmem_to_hbm [thread:$0]  %s476_s10, 1024, %s966_s5, [#allocation4], %s861_s28, %s861_s28, %s862_s29  }
 0x267   :  { %858 = dma.done.wait [#allocation4], 1024  }
 0x268   :  { %859 = vsyncadd [#allocation4], 4294966272 }
 0x269   :  { %485 = vsyncpa [#allocation3], 1 }
 0x26a   :  { %486 = vsyncpa [#allocation6], 1 }
 0x26b   :  { %487 = vsyncpa [#allocation4], 1 }

// kernel: tpu_custom_call.1
= control target key start
LH: loop header
LB: loop body
LE: loop exit
PB: predicated region body
PF: predicated region fallthrough
CT: control target
= control target key end

     0   :  { %10 = vsyncpa [#allocation3], 0  ;;  %s961_s0 = inlined_call_operand.hbm [shape: f32[64,256], index: 0, kind: input, shape index: {}]   ;;  %s962_s1 = inlined_call_operand.hbm [shape: f32[256,128], index: 1, kind: input, shape index: {}]   ;;  %s963_s2 = inlined_call_operand.vmem [shape: f32[1,128], index: 2, kind: input, shape index: {}]   ;;  %s964_s3 = inlined_call_operand.hbm [shape: f32[128,128], index: 3, kind: input, shape index: {}]   ;;  %s965_s4 = inlined_call_operand.vmem [shape: f32[1,128], index: 4, kind: input, shape index: {}]   ;;  %s966_s5 = inlined_call_operand.hbm [shape: f32[64,128], index: 5, kind: output, shape index: {}]  }
   0x1   :  { %11 = vsyncpa [#allocation6], 0 }
   0x2   :  { %12 = vsyncpa [#allocation4], 0  ;;  %s860_s18 = smov [#allocation5]   ;;  %s766_s22 = scalar_lea.hbm %s962_s1, 4096 }
   0x3   :  { %s30_s19 = sshll.u32 %s860_s18, 4  ;;  %p767_p0 = scmp.ne.s32.totalorder %s962_s1, %s766_s22  ;;  %s31_s19 = int_to_ptr.vmem [resolvable:$true] %s30_s19 }
   0x4   :  { %p770_p1 = scmp.lt.u32.totalorder %s766_s22, %s962_s1 }
   0x6   :  { %p772_p2 = pnand %p770_p1, %p767_p0 }
   0x8   :  { %775 = shalt.err (!%p772_p2)
}
   0x9   :  { %s776_s27 = scalar_lea.vmem %s31_s19, 4096  ;;  %p781_p4 = scmp.lt.s32.totalorder %s31_s19, %s31_s19 }
   0xa   :  { %p777_p3 = scmp.ne.s32.totalorder %s31_s19, %s776_s27  ;;  %p782_p5 = scmp.lt.s32.totalorder %s776_s27, %s776_s27 }
   0xc   :  { %p783_p6 = por %p782_p5, %p781_p4 }
   0xe   :  { %p784_p7 = pnand %p783_p6, %p777_p3 }
  0x10   :  { %787 = shalt.err (!%p784_p7)
}
  0x11   :  { %s861_s28 = smov 128   ;;  %s862_s29 = smov 8  }
  0x12   :  { %36 = dma.hbm_to_vmem [thread:$0]  %s962_s1, 4096, %s31_s19, [#allocation6], %s861_s28, %s861_s28, %s862_s29  }
  0x13   :  { %s863_s7 = smov [#allocation2]   ;;  %s788_s11 = scalar_lea.hbm %s961_s0, 2048 }
  0x14   :  { %s18_s8 = sshll.u32 %s863_s7, 4  ;;  %p789_p8 = scmp.ne.s32.totalorder %s961_s0, %s788_s11  ;;  %s19_s8 = int_to_ptr.vmem [resolvable:$true] %s18_s8 }
  0x15   :  { %p792_p9 = scmp.lt.u32.totalorder %s788_s11, %s961_s0 }
  0x17   :  { %p794_p10 = pnand %p792_p9, %p789_p8 }
  0x19   :  { %797 = shalt.err (!%p794_p10)
}
  0x1a   :  { %s798_s16 = scalar_lea.vmem %s19_s8, 2048  ;;  %p803_p12 = scmp.lt.s32.totalorder %s19_s8, %s19_s8 }
  0x1b   :  { %p799_p11 = scmp.ne.s32.totalorder %s19_s8, %s798_s16  ;;  %p804_p13 = scmp.lt.s32.totalorder %s798_s16, %s798_s16 }
  0x1d   :  { %p805_p0 = por %p804_p13, %p803_p12 }
  0x1f   :  { %p806_p1 = pnand %p805_p0, %p799_p11 }
  0x21   :  { %809 = shalt.err (!%p806_p1)
}
  0x22   :  { %s864_s1 = smov 256   ;;  %s865_s17 = smov 16  }
  0x23   :  { %24 = dma.hbm_to_vmem [thread:$0]  %s961_s0, 2048, %s19_s8, [#allocation3], %s864_s1, %s864_s1, %s865_s17  }
  0x24   :  { %s866_s20 = smov [#allocation7]   ;;  %s810_s24 = scalar_lea.hbm %s964_s3, 2048 }
  0x25   :  { %s44_s21 = sshll.u32 %s866_s20, 4  ;;  %p811_p2 = scmp.ne.s32.totalorder %s964_s3, %s810_s24  ;;  %s45_s21 = int_to_ptr.vmem [resolvable:$true] %s44_s21 }
  0x26   :  { %p814_p3 = scmp.lt.u32.totalorder %s810_s24, %s964_s3 }
  0x28   :  { %p816_p4 = pnand %p814_p3, %p811_p2 }
  0x2a   :  { %819 = shalt.err (!%p816_p4)
}
  0x2b   :  { %s820_s6 = scalar_lea.vmem %s45_s21, 2048  ;;  %p825_p6 = scmp.lt.s32.totalorder %s45_s21, %s45_s21 }
  0x2c   :  { %p821_p5 = scmp.ne.s32.totalorder %s45_s21, %s820_s6  ;;  %p826_p7 = scmp.lt.s32.totalorder %s820_s6, %s820_s6 }
  0x2e   :  { %p827_p8 = por %p826_p7, %p825_p6 }
  0x30   :  { %p828_p9 = pnand %p827_p8, %p821_p5 }
  0x32   :  { %831 = shalt.err (!%p828_p9)
}
  0x33   :  { %50 = dma.hbm_to_vmem [thread:$0]  %s964_s3, 2048, %s45_s21, [#allocation6], %s861_s28, %s861_s28, %s862_s29  }
  0x34   :  { %854 = dma.done.wait [#allocation3], 2048  }
  0x35   :  { %855 = vsyncadd [#allocation3], 4294965248 }
  0x36   :  { %856 = dma.done.wait [#allocation6], 6144  }
  0x37   :  { %857 = vsyncadd [#allocation6], 4294961152  ;;  %v94_v0 = vld [vmem:[#allocation5 + $0x80] sm:$0xff]  ;;  %v95_v1 = vld [vmem:[#allocation5 + $0x88] sm:$0xff] }
  0x38   :  { %v78_v2 = vld [vmem:[#allocation5] sm:$0xff]  ;;  %v630_v3 = vpack.c.bf16 %v95_v1, %v94_v0  ;;  %v79_v4 = vld [vmem:[#allocation5 + $0x8] sm:$0xff]  ;;  %v96_v5 = vld [vmem:[#allocation5 + $0x90] sm:$0xff] }
  0x39   :  { %v97_v6 = vld [vmem:[#allocation5 + $0x98] sm:$0xff]  ;;  %v632_v7 = vpack.c.bf16 %v79_v4, %v78_v2  ;;  %v80_v9 = vld [vmem:[#allocation5 + $0x10] sm:$0xff]  ;;  %v98_v11 = vld [vmem:[#allocation5 + $0xa0] sm:$0xff] }
  0x3a   :  { %v634_v8 = vpack.c.bf16 %v97_v6, %v96_v5  ;;  %v81_v10 = vld [vmem:[#allocation5 + $0x18] sm:$0xff]  ;;  %631 = vmatprep.subr.bf16.mxu0 %v630_v3  ;;  %v99_v12 = vld [vmem:[#allocation5 + $0xa8] sm:$0xff]  ;;  %v82_v15 = vld [vmem:[#allocation5 + $0x20] sm:$0xff] }
  0x3b   :  { %633 = vmatpush3.bf16.msra.mxu0 %v632_v7  ;;  %v636_v13 = vpack.c.bf16 %v81_v10, %v80_v9  ;;  %v638_v14 = vpack.c.bf16 %v99_v12, %v98_v11  ;;  %v83_v16 = vld [vmem:[#allocation5 + $0x28] sm:$0xff]  ;;  %v100_v17 = vld [vmem:[#allocation5 + $0xb0] sm:$0xff]  ;;  %v101_v18 = vld [vmem:[#allocation5 + $0xb8] sm:$0xff] }
  0x3c   :  { %635 = vmatprep.subr.bf16.mxu0 %v634_v8  ;;  %v640_v19 = vpack.c.bf16 %v83_v16, %v82_v15  ;;  %v642_v20 = vpack.c.bf16 %v101_v18, %v100_v17  ;;  %v84_v21 = vld [vmem:[#allocation5 + $0x30] sm:$0xff]  ;;  %v85_v22 = vld [vmem:[#allocation5 + $0x38] sm:$0xff]  ;;  %v102_v23 = vld [vmem:[#allocation5 + $0xc0] sm:$0xff] }
  0x3d   :  { %v103_v24 = vld [vmem:[#allocation5 + $0xc8] sm:$0xff]  ;;  %v644_v26 = vpack.c.bf16 %v85_v22, %v84_v21  ;;  %v86_v28 = vld [vmem:[#allocation5 + $0x40] sm:$0xff]  ;;  %v104_v30 = vld [vmem:[#allocation5 + $0xd0] sm:$0xff] }
  0x3e   :  { %v63_v25 = vld [vmem:[#allocation2 + $0x8] sm:$0xff]  ;;  %v646_v27 = vpack.c.bf16 %v103_v24, %v102_v23  ;;  %v105_v31 = vld [vmem:[#allocation5 + $0xd8] sm:$0xff]  ;;  %v88_v34 = vld [vmem:[#allocation5 + $0x50] sm:$0xff] }
  0x3f   :  { %637 = vmatpush3.bf16.msra.mxu0 %v636_v13  ;;  %181 = vmatprep.mubr.f32.mxu0 %v63_v25  ;;  %v87_v29 = vld [vmem:[#allocation5 + $0x48] sm:$0xff]  ;;  %v650_v33 = vpack.c.bf16 %v105_v31, %v104_v30  ;;  %v89_v35 = vld [vmem:[#allocation5 + $0x58] sm:$0xff]  ;;  %v106_v36 = vld [vmem:[#allocation5 + $0xe0] sm:$0xff] }
  0x40   :  { %639 = vmatprep.subr.bf16.mxu0 %v638_v14  ;;  %v648_v32 = vpack.c.bf16 %v87_v29, %v86_v28  ;;  %v107_v37 = vld [vmem:[#allocation5 + $0xe8] sm:$0xff]  ;;  %v652_v38 = vpack.c.bf16 %v89_v35, %v88_v34  ;;  %v90_v40 = vld [vmem:[#allocation5 + $0x60] sm:$0xff]  ;;  %v108_v42 = vld [vmem:[#allocation5 + $0xf0] sm:$0xff] }
  0x41   :  { %v654_v39 = vpack.c.bf16 %v107_v37, %v106_v36  ;;  %v91_v41 = vld [vmem:[#allocation5 + $0x68] sm:$0xff]  ;;  %v109_v43 = vld [vmem:[#allocation5 + $0xf8] sm:$0xff]  ;;  %v92_v46 = vld [vmem:[#allocation5 + $0x70] sm:$0xff] }
  0x42   :  { %v656_v44 = vpack.c.bf16 %v91_v41, %v90_v40  ;;  %v658_v45 = vpack.c.bf16 %v109_v43, %v108_v42  ;;  %v93_v47 = vld [vmem:[#allocation5 + $0x78] sm:$0xff]  ;;  %v62_v49 = vld [vmem:[#allocation2] sm:$0xff]  ;;  %v64_v51 = vld [vmem:[#allocation2 + $0x10] sm:$0xff] }
  0x43   :  { %641 = vmatpush3.bf16.msra.mxu0 %v640_v19  ;;  %v660_v48 = vpack.c.bf16 %v93_v47, %v92_v46  ;;  %v65_v50 = vld [vmem:[#allocation2 + $0x18] sm:$0xff]  ;;  %v67_v52 = vld [vmem:[#allocation2 + $0x28] sm:$0xff]  ;;  %v66_v53 = vld [vmem:[#allocation2 + $0x20] sm:$0xff] }
  0x44   :  { %643 = vmatprep.subr.bf16.mxu0 %v642_v20  ;;  %v69_v54 = vld [vmem:[#allocation2 + $0x38] sm:$0xff]  ;;  %v68_v55 = vld [vmem:[#allocation2 + $0x30] sm:$0xff]  ;;  %v71_v56 = vld [vmem:[#allocation2 + $0x48] sm:$0xff] }
  0x45   :  { %v70_v57 = vld [vmem:[#allocation2 + $0x40] sm:$0xff]  ;;  %v73_v58 = vld [vmem:[#allocation2 + $0x58] sm:$0xff]  ;;  %v72_v59 = vld [vmem:[#allocation2 + $0x50] sm:$0xff] }
  0x46   :  { %v75_v60 = vld [vmem:[#allocation2 + $0x68] sm:$0xff]  ;;  %v74_v61 = vld [vmem:[#allocation2 + $0x60] sm:$0xff]  ;;  %v77_v62 = vld [vmem:[#allocation2 + $0x78] sm:$0xff] }
  0x47   :  { %645 = vmatpush3.bf16.msra.mxu0 %v644_v26  ;;  %v76_v63 = vld [vmem:[#allocation2 + $0x70] sm:$0xff]  ;;  %v278_v0 = vld [vmem:[#allocation7] sm:$0xff]  ;;  %v279_v1 = vld [vmem:[#allocation7 + $0x8] sm:$0xff] }
  0x48   :  { %647 = vmatprep.subr.bf16.mxu0 %v646_v27  ;;  %v662_v2 = vpack.c.bf16 %v279_v1, %v278_v0  ;;  %v280_v3 = vld [vmem:[#allocation7 + $0x10] sm:$0xff]  ;;  %v281_v4 = vld [vmem:[#allocation7 + $0x18] sm:$0xff]  ;;  %v282_v6 = vld [vmem:[#allocation7 + $0x20] sm:$0xff] }
  0x49   :  { %v666_v5 = vpack.c.bf16 %v281_v4, %v280_v3  ;;  %v283_v7 = vld [vmem:[#allocation7 + $0x28] sm:$0xff]  ;;  %v284_v9 = vld [vmem:[#allocation7 + $0x30] sm:$0xff]  ;;  %v285_v10 = vld [vmem:[#allocation7 + $0x38] sm:$0xff] }
  0x4a   :  { %663 = vmatprep.subr.bf16.mxu1 %v662_v2  ;;  %v670_v8 = vpack.c.bf16 %v283_v7, %v282_v6  ;;  %v674_v11 = vpack.c.bf16 %v285_v10, %v284_v9  ;;  %v286_v12 = vld [vmem:[#allocation7 + $0x40] sm:$0xff]  ;;  %v287_v13 = vld [vmem:[#allocation7 + $0x48] sm:$0xff]  ;;  %v288_v15 = vld [vmem:[#allocation7 + $0x50] sm:$0xff] }
  0x4b   :  { %649 = vmatpush3.bf16.msra.mxu0 %v648_v32  ;;  %665 = vmatpush3.bf16.msra.mxu1 %v662_v2  ;;  %v678_v14 = vpack.c.bf16 %v287_v13, %v286_v12  ;;  %v289_v16 = vld [vmem:[#allocation7 + $0x58] sm:$0xff]  ;;  %v290_v18 = vld [vmem:[#allocation7 + $0x60] sm:$0xff]  ;;  %v291_v19 = vld [vmem:[#allocation7 + $0x68] sm:$0xff] }
  0x4c   :  { %651 = vmatprep.subr.bf16.mxu0 %v650_v33  ;;  %667 = vmatprep.subr.bf16.mxu1 %v666_v5  ;;  %v682_v17 = vpack.c.bf16 %v289_v16, %v288_v15  ;;  %v686_v20 = vpack.c.bf16 %v291_v19, %v290_v18  ;;  %v292_v21 = vld [vmem:[#allocation7 + $0x70] sm:$0xff]  ;;  %v293_v22 = vld [vmem:[#allocation7 + $0x78] sm:$0xff]  ;;  %v488_v26 = vld [vmem:[%s963_s2] ss:$0 sm:$0xff] }
  0x4d   :  { %v690_v23 = vpack.c.bf16 %v293_v22, %v292_v21 }
  0x4f   :  { %653 = vmatpush3.bf16.msra.mxu0 %v652_v38  ;;  %669 = vmatpush3.bf16.msra.mxu1 %v666_v5 }
  0x50   :  { %655 = vmatprep.subr.bf16.mxu0 %v654_v39  ;;  %671 = vmatprep.subr.bf16.mxu1 %v670_v8 }
  0x53   :  { %657 = vmatpush3.bf16.msra.mxu0 %v656_v44  ;;  %673 = vmatpush3.bf16.msra.mxu1 %v670_v8 }
  0x54   :  { %659 = vmatprep.subr.bf16.mxu0 %v658_v45  ;;  %675 = vmatprep.subr.bf16.mxu1 %v674_v11 }
  0x57   :  { %661 = vmatpush3.bf16.msra.mxu0 %v660_v48  ;;  %677 = vmatpush3.bf16.msra.mxu1 %v674_v11 }
  0x58   :  { %679 = vmatprep.subr.bf16.mxu1 %v678_v14 }
  0x5a   :  { %182 = vmatmul.mubr.f32.vlgmr.msra.gmra.mrb[0].mxu0 %v62_v49 }
  0x5b   :  { %186 = vmatprep.mubr.f32.mxu0 %v65_v50  ;;  %681 = vmatpush3.bf16.msra.mxu1 %v678_v14 }
  0x5c   :  { %683 = vmatprep.subr.bf16.mxu1 %v682_v17 }
  0x5e   :  { %187 = vmatmul.mubr.f32.gmra.mrb[2].mxu0 %v64_v51 }
  0x5f   :  { %191 = vmatprep.mubr.f32.mxu0 %v67_v52  ;;  %685 = vmatpush3.bf16.msra.mxu1 %v682_v17 }
  0x60   :  { %687 = vmatprep.subr.bf16.mxu1 %v686_v20 }
  0x62   :  { %192 = vmatmul.mubr.f32.gmra.mrb[4].mxu0 %v66_v53 }
  0x63   :  { %196 = vmatprep.mubr.f32.mxu0 %v69_v54  ;;  %689 = vmatpush3.bf16.msra.mxu1 %v686_v20 }
  0x64   :  { %691 = vmatprep.subr.bf16.mxu1 %v690_v23 }
  0x66   :  { %197 = vmatmul.mubr.f32.gmra.mrb[6].mxu0 %v68_v55 }
  0x67   :  { %201 = vmatprep.mubr.f32.mxu0 %v71_v56  ;;  %693 = vmatpush3.bf16.msra.mxu1 %v690_v23 }
  0x6a   :  { %202 = vmatmul.mubr.f32.gmra.mrb[8].mxu0 %v70_v57 }
  0x6b   :  { %206 = vmatprep.mubr.f32.mxu0 %v73_v58 }
  0x6e   :  { %207 = vmatmul.mubr.f32.gmra.mrb[10].mxu0 %v72_v59 }
  0x6f   :  { %211 = vmatprep.mubr.f32.mxu0 %v75_v60 }
  0x72   :  { %212 = vmatmul.mubr.f32.gmra.mrb[12].mxu0 %v74_v61 }
  0x73   :  { %216 = vmatprep.mubr.f32.mxu0 %v77_v62 }
  0x76   :  { %217 = vmatmul.mubr.f32.gmra.mrb[14].mxu0 %v76_v63 }
 0x12d   :  { %v538_v24 = vpop.f32.mrb[0].mxu0 }
 0x12e   :  { %v539_v25 = vpop.f32.mrb[1].mxu0 }
 0x12f   :  { %v540_v27 = vadd.f32 %v539_v25, %v538_v24 }
 0x131   :  { %v541_v28 = vpop.f32.mrb[2].mxu0  ;;  %v184_v29 = vadd.f32 %v540_v27, %v488_v26 }
 0x132   :  { %v542_v30 = vpop.f32.mrb[3].mxu0 }
 0x133   :  { %v543_v31 = vadd.f32 %v542_v30, %v541_v28  ;;  %v489_v32 = vmul.f32 -1.442695, %v184_v29 }
 0x135   :  { %v189_v33 = vadd.f32 %v543_v31, %v488_v26  ;;  %v544_v34 = vpop.f32.mrb[4].mxu0  ;;  %702 = vpow2.f32 %v489_v32 }
 0x136   :  { %v545_v35 = vpop.f32.mrb[5].mxu0 }
 0x137   :  { %v490_v36 = vmul.f32 -1.442695, %v189_v33  ;;  %v546_v37 = vadd.f32 %v545_v35, %v544_v34 }
 0x139   :  { %704 = vpow2.f32 %v490_v36  ;;  %v194_v38 = vadd.f32 %v546_v37, %v488_v26  ;;  %v547_v39 = vpop.f32.mrb[6].mxu0 }
 0x13a   :  { %v548_v40 = vpop.f32.mrb[7].mxu0 }
 0x13b   :  { %v491_v41 = vmul.f32 -1.442695, %v194_v38  ;;  %v549_v42 = vadd.f32 %v548_v40, %v547_v39 }
 0x13d   :  { %706 = vpow2.f32 %v491_v41  ;;  %v199_v43 = vadd.f32 %v549_v42, %v488_v26  ;;  %v550_v44 = vpop.f32.mrb[8].mxu0 }
 0x13e   :  { %v551_v45 = vpop.f32.mrb[9].mxu0 }
 0x13f   :  { %v703_v46 = vpop.eup %702  ;;  %v492_v47 = vmul.f32 -1.442695, %v199_v43  ;;  %v552_v48 = vadd.f32 %v551_v45, %v550_v44 }
 0x140   :  { %v246_v49 = vadd.f32 1.0, %v703_v46 }
 0x141   :  { %708 = vpow2.f32 %v492_v47  ;;  %v204_v50 = vadd.f32 %v552_v48, %v488_v26  ;;  %v553_v51 = vpop.f32.mrb[10].mxu0 }
 0x142   :  { %v554_v52 = vpop.f32.mrb[11].mxu0  ;;  %710 = vrcp.f32 %v246_v49 }
 0x143   :  { %v705_v53 = vpop.eup %704  ;;  %v493_v54 = vmul.f32 -1.442695, %v204_v50  ;;  %v555_v55 = vadd.f32 %v554_v52, %v553_v51 }
 0x144   :  { %v247_v56 = vadd.f32 1.0, %v705_v53 }
 0x145   :  { %712 = vpow2.f32 %v493_v54  ;;  %v209_v57 = vadd.f32 %v555_v55, %v488_v26  ;;  %v556_v58 = vpop.f32.mrb[12].mxu0 }
 0x146   :  { %714 = vrcp.f32 %v247_v56  ;;  %v557_v59 = vpop.f32.mrb[13].mxu0 }
 0x147   :  { %v707_v60 = vpop.eup %706  ;;  %v494_v61 = vmul.f32 -1.442695, %v209_v57  ;;  %v558_v62 = vadd.f32 %v557_v59, %v556_v58 }
 0x148   :  { %v248_v63 = vadd.f32 1.0, %v707_v60 }
 0x149   :  { %716 = vpow2.f32 %v494_v61  ;;  %v214_v0 = vadd.f32 %v558_v62, %v488_v26  ;;  %v559_v1 = vpop.f32.mrb[14].mxu0 }
 0x14a   :  { %718 = vrcp.f32 %v248_v63  ;;  %v560_v2 = vpop.f32.mrb[15].mxu0 }
 0x14b   :  { %v709_v3 = vpop.eup %708  ;;  %v495_v4 = vmul.f32 -1.442695, %v214_v0  ;;  %v561_v5 = vadd.f32 %v560_v2, %v559_v1 }
 0x14c   :  { %v711_v6 = vpop.eup %710  ;;  %v249_v7 = vadd.f32 1.0, %v709_v3 }
 0x14d   :  { %720 = vpow2.f32 %v495_v4  ;;  %v219_v8 = vadd.f32 %v561_v5, %v488_v26  ;;  %v270_v9 = vmul.f32 %v711_v6, %v184_v29 }
 0x14e   :  { %722 = vrcp.f32 %v249_v7 }
 0x14f   :  { %v713_v10 = vpop.eup %712  ;;  %v496_v11 = vmul.f32 -1.442695, %v219_v8  ;;  %618 = vmatprep.mubr.f32.mxu1 %v270_v9 }
 0x150   :  { %v715_v12 = vpop.eup %714  ;;  %v250_v13 = vadd.f32 1.0, %v713_v10 }
 0x151   :  { %724 = vpow2.f32 %v496_v11  ;;  %v271_v14 = vmul.f32 %v715_v12, %v189_v33  ;;  %v497_v33 = vld [vmem:[%s965_s4] ss:$0 sm:$0xff]  ;;  %s867_s4 = smov [#allocation8]  }
 0x152   :  { %726 = vrcp.f32 %v250_v13  ;;  %s475_s10 = sshll.u32 %s867_s4, 4  ;;  %s476_s10 = int_to_ptr.vmem [resolvable:$true] %s475_s10 }
 0x153   :  { %v717_v15 = vpop.eup %716  ;;  %619 = vmatmul.mubr.f32.vlgmr.msra.gmra.mrb[0].mxu1 %v271_v14  ;;  %s832_s11 = scalar_lea.vmem %s476_s10, 1024  ;;  %p837_p11 = scmp.lt.s32.totalorder %s476_s10, %s476_s10 }
 0x154   :  { %v719_v16 = vpop.eup %718  ;;  %v251_v17 = vadd.f32 1.0, %v717_v15  ;;  %p833_p10 = scmp.ne.s32.totalorder %s476_s10, %s832_s11  ;;  %p838_p12 = scmp.lt.s32.totalorder %s832_s11, %s832_s11 }
 0x155   :  { %v272_v18 = vmul.f32 %v719_v16, %v194_v38 }
 0x156   :  { %728 = vrcp.f32 %v251_v17  ;;  %p839_p13 = por %p838_p12, %p837_p11 }
 0x157   :  { %v721_v19 = vpop.eup %720  ;;  %621 = vmatprep.mubr.f32.mxu1 %v272_v18 }
 0x158   :  { %v723_v20 = vpop.eup %722  ;;  %v252_v21 = vadd.f32 1.0, %v721_v19  ;;  %p840_p0 = pnand %p839_p13, %p833_p10 }
 0x159   :  { %v273_v22 = vmul.f32 %v723_v20, %v199_v43 }
 0x15a   :  { %730 = vrcp.f32 %v252_v21 }
 0x15b   :  { %v725_v23 = vpop.eup %724  ;;  %622 = vmatmul.mubr.f32.gmra.mrb[2].mxu1 %v273_v22 }
 0x15c   :  { %v727_v24 = vpop.eup %726  ;;  %v253_v25 = vadd.f32 1.0, %v725_v23 }
 0x15d   :  { %v274_v26 = vmul.f32 %v727_v24, %v204_v50 }
 0x15e   :  { %732 = vrcp.f32 %v253_v25 }
 0x15f   :  { %624 = vmatprep.mubr.f32.mxu1 %v274_v26 }
 0x160   :  { %v729_v27 = vpop.eup %728 }
 0x161   :  { %v275_v28 = vmul.f32 %v729_v27, %v209_v57 }
 0x163   :  { %625 = vmatmul.mubr.f32.gmra.mrb[4].mxu1 %v275_v28 }
 0x164   :  { %v731_v29 = vpop.eup %730 }
 0x165   :  { %v276_v30 = vmul.f32 %v731_v29, %v214_v0 }
 0x167   :  { %627 = vmatprep.mubr.f32.mxu1 %v276_v30 }
 0x168   :  { %v733_v31 = vpop.eup %732 }
 0x169   :  { %v277_v32 = vmul.f32 %v733_v31, %v219_v8 }
 0x16b   :  { %628 = vmatmul.mubr.f32.gmra.mrb[6].mxu1 %v277_v32 }
 0x226   :  { %v620_v34 = vpop.f32.mrb[0].mxu1 }
 0x227   :  { %v373_v35 = vadd.f32 %v620_v34, %v497_v33  ;;  %v367_v36 = vpop.f32.mrb[1].mxu1 }
 0x228   :  { %v368_v37 = vadd.f32 %v497_v33, %v367_v36 }
 0x229   :  { %v499_v38 = vmul.f32 -1.442695, %v373_v35 }
 0x22a   :  { %v498_v39 = vmul.f32 -1.442695, %v368_v37 }
 0x22b   :  { %734 = vpow2.f32 %v499_v38 }
 0x22c   :  { %736 = vpow2.f32 %v498_v39 }
 0x22e   :  { %v623_v40 = vpop.f32.mrb[2].mxu1 }
 0x22f   :  { %v383_v41 = vadd.f32 %v623_v40, %v497_v33  ;;  %v377_v42 = vpop.f32.mrb[3].mxu1 }
 0x230   :  { %v378_v43 = vadd.f32 %v497_v33, %v377_v42 }
 0x231   :  { %v501_v44 = vmul.f32 -1.442695, %v383_v41 }
 0x232   :  { %v500_v45 = vmul.f32 -1.442695, %v378_v43 }
 0x233   :  { %738 = vpow2.f32 %v501_v44 }
 0x234   :  { %740 = vpow2.f32 %v500_v45 }
 0x235   :  { %v735_v46 = vpop.eup %734 }
 0x236   :  { %v737_v47 = vpop.eup %736  ;;  %v431_v48 = vadd.f32 1.0, %v735_v46  ;;  %v626_v49 = vpop.f32.mrb[4].mxu1 }
 0x237   :  { %v430_v50 = vadd.f32 1.0, %v737_v47  ;;  %v393_v51 = vadd.f32 %v626_v49, %v497_v33  ;;  %v387_v52 = vpop.f32.mrb[5].mxu1 }
 0x238   :  { %742 = vrcp.f32 %v431_v48  ;;  %v388_v53 = vadd.f32 %v497_v33, %v387_v52 }
 0x239   :  { %744 = vrcp.f32 %v430_v50  ;;  %v503_v54 = vmul.f32 -1.442695, %v393_v51 }
 0x23a   :  { %v502_v55 = vmul.f32 -1.442695, %v388_v53 }
 0x23b   :  { %746 = vpow2.f32 %v503_v54 }
 0x23c   :  { %748 = vpow2.f32 %v502_v55 }
 0x23d   :  { %v739_v56 = vpop.eup %738 }
 0x23e   :  { %v741_v57 = vpop.eup %740  ;;  %v433_v58 = vadd.f32 1.0, %v739_v56  ;;  %v629_v59 = vpop.f32.mrb[6].mxu1 }
 0x23f   :  { %v432_v60 = vadd.f32 1.0, %v741_v57  ;;  %v403_v61 = vadd.f32 %v629_v59, %v497_v33  ;;  %v397_v62 = vpop.f32.mrb[7].mxu1 }
 0x240   :  { %750 = vrcp.f32 %v433_v58  ;;  %v398_v63 = vadd.f32 %v497_v33, %v397_v62 }
 0x241   :  { %752 = vrcp.f32 %v432_v60  ;;  %v505_v0 = vmul.f32 -1.442695, %v403_v61 }
 0x242   :  { %v743_v1 = vpop.eup %742  ;;  %v504_v2 = vmul.f32 -1.442695, %v398_v63 }
 0x243   :  { %v745_v3 = vpop.eup %744  ;;  %v455_v4 = vmul.f32 %v743_v1, %v373_v35  ;;  %754 = vpow2.f32 %v505_v0 }
 0x244   :  { %v454_v5 = vmul.f32 %v745_v3, %v368_v37  ;;  %756 = vpow2.f32 %v504_v2 }
 0x245   :  { %v747_v6 = vpop.eup %746  ;;  %463 = vst [vmem:[#allocation8 + $0x8] sm:$0xff] %v455_v4 }
 0x246   :  { %v749_v7 = vpop.eup %748  ;;  %462 = vst [vmem:[#allocation8] sm:$0xff] %v454_v5  ;;  %v435_v8 = vadd.f32 1.0, %v747_v6 }
 0x247   :  { %v434_v9 = vadd.f32 1.0, %v749_v7 }
 0x248   :  { %758 = vrcp.f32 %v435_v8 }
 0x249   :  { %760 = vrcp.f32 %v434_v9 }
 0x24a   :  { %v751_v10 = vpop.eup %750 }
 0x24b   :  { %v753_v11 = vpop.eup %752  ;;  %v457_v12 = vmul.f32 %v751_v10, %v383_v41 }
 0x24c   :  { %v456_v13 = vmul.f32 %v753_v11, %v378_v43 }
 0x24d   :  { %v755_v14 = vpop.eup %754  ;;  %465 = vst [vmem:[#allocation8 + $0x18] sm:$0xff] %v457_v12 }
 0x24e   :  { %v757_v15 = vpop.eup %756  ;;  %464 = vst [vmem:[#allocation8 + $0x10] sm:$0xff] %v456_v13  ;;  %v437_v16 = vadd.f32 1.0, %v755_v14 }
 0x24f   :  { %v436_v17 = vadd.f32 1.0, %v757_v15 }
 0x250   :  { %762 = vrcp.f32 %v437_v16 }
 0x251   :  { %764 = vrcp.f32 %v436_v17 }
 0x252   :  { %v759_v18 = vpop.eup %758 }
 0x253   :  { %v761_v19 = vpop.eup %760  ;;  %v459_v20 = vmul.f32 %v759_v18, %v393_v51 }
 0x254   :  { %v458_v21 = vmul.f32 %v761_v19, %v388_v53 }
 0x255   :  { %467 = vst [vmem:[#allocation8 + $0x28] sm:$0xff] %v459_v20 }
 0x256   :  { %466 = vst [vmem:[#allocation8 + $0x20] sm:$0xff] %v458_v21 }
 0x25a   :  { %v763_v22 = vpop.eup %762 }
 0x25b   :  { %v765_v23 = vpop.eup %764  ;;  %v461_v24 = vmul.f32 %v763_v22, %v403_v61 }
 0x25c   :  { %v460_v25 = vmul.f32 %v765_v23, %v398_v63 }
 0x25d   :  { %469 = vst [vmem:[#allocation8 + $0x38] sm:$0xff] %v461_v24 }
 0x25e   :  { %468 = vst [vmem:[#allocation8 + $0x30] sm:$0xff] %v460_v25 }
 0x25f   :  { %843 = shalt.err (!%p840_p0)
}
 0x260   :  { %s844_s14 = scalar_lea.hbm %s966_s5, 1024 }
 0x261   :  { %p845_p1 = scmp.ne.s32.totalorder %s966_s5, %s844_s14  ;;  %p848_p2 = scmp.lt.u32.totalorder %s844_s14, %s966_s5 }
 0x263   :  { %p850_p3 = pnand %p848_p2, %p845_p1 }
 0x265   :  { %853 = shalt.err (!%p850_p3)
}
 0x266   :  { %481 = dma.vmem_to_hbm [thread:$0]  %s476_s10, 1024, %s966_s5, [#allocation4], %s861_s28, %s861_s28, %s862_s29  }
 0x267   :  { %858 = dma.done.wait [#allocation4], 1024  }
 0x268   :  { %859 = vsyncadd [#allocation4], 4294966272 }
 0x269   :  { %485 = vsyncpa [#allocation3], 1 }
 0x26a   :  { %486 = vsyncpa [#allocation6], 1 }
 0x26b   :  { %487 = vsyncpa [#allocation4], 1 }

</bundles_post_ra>
